<compile_context>
chip_gen: v5e
topology: v5e:2x2
jax: 0.10.0
libtpu: 0.0.40
codegen_flags: <defaults>
</compile_context>

<pallas_src>
import functools

import jax
import jax.numpy as jnp
from jax.experimental import pallas as pl
from jax.experimental.pallas import tpu as pltpu


def _round_up(n, m):
    return ((n + m - 1) // m) * m


def _default_act_dtype():
    """bf16 tanh on v6e/v7x (bf16 EUP); f32 elsewhere (v5e/v5p/v4 lack a bf16 EUP path)."""
    try:
        kind = jax.devices()[0].device_kind.lower()
    except Exception:
        return jnp.float32
    return jnp.bfloat16 if ("v6" in kind or "v7" in kind) else jnp.float32


def _choose_tile_rows(rows, target_rows, min_grid=4):
    """Pick a sublane-aligned row tile: big enough to hide per-step overhead,
    small enough that the grid has >= min_grid steps (v7x has 2 TCs)."""
    if rows <= 8:
        return rows                                   # single tiny block (== full dim)
    cap = _round_up(-(-rows // min_grid), 8)          # ~rows/min_grid, multiple of 8
    return max(8, min(target_rows, cap))


# ----------------------------------------------------------------------------
# Kernel (packed, batch-major, lane-dense layout).
#   x_ref  : [tile_rows, pack*d_in]   f32   (pack samples per row, row-major)
#   w1_ref : [pack*d_in , pack*H   ]  bf16  (block-diagonal kron(I_pack, W1))
#   b1_ref : [1, pack*H]              f32
#   w23_ref: [pack*H, pack*H]         bf16  (block-diag of the f32-folded W2@W3)
#   b23_ref: [1, pack*H]              f32
#   w4_ref : [pack*H, pack*d_out]     bf16
#   b4_ref : [1, pack*d_out]          f32
#   o_ref  : [tile_rows, pack*d_out]  f32   (lane-dense, reshapes back for free)
# ----------------------------------------------------------------------------
def cascaded_kernel(x_ref, w1_ref, b1_ref, w23_ref, b23_ref, w4_ref, b4_ref,
                    o_ref, *, act_dtype):
    x = x_ref[...].astype(jnp.bfloat16)               # bf16 MXU inputs

    # dpd first Linear + tanh
    h1 = jnp.dot(x, w1_ref[...], preferred_element_type=jnp.float32) + b1_ref[...]
    a1 = jnp.tanh(h1.astype(act_dtype)).astype(jnp.bfloat16)

    # folded (dpd second Linear) o (pa first Linear) + tanh
    h2 = jnp.dot(a1, w23_ref[...], preferred_element_type=jnp.float32) + b23_ref[...]
    a2 = jnp.tanh(h2.astype(act_dtype)).astype(jnp.bfloat16)

    # pa second Linear
    out = jnp.dot(a2, w4_ref[...], preferred_element_type=jnp.float32) + b4_ref[...]
    o_ref[...] = out.astype(o_ref.dtype)


def prepare_kernel_params(params, pack):
    """Fold the two middle Linears (in f32), build block-diagonal bf16 weights and
    tiled f32 biases for the packed (pack samples / 128 lanes) layout."""
    (w1, b1, w2, b2, w3, b3, w4, b4) = params          # W: [fan_in, fan_out], b: [1, fan_out]
    w23 = w2 @ w3                                      # exact algebraic fold (f32)
    b23 = b2 @ w3 + b3
    eye = jnp.eye(pack, dtype=jnp.float32)
    blk = lambda w: jnp.kron(eye, w).astype(jnp.bfloat16)   # block-diagonal, bf16 once
    rep = lambda b: jnp.tile(b.astype(jnp.float32), (1, pack))
    return (blk(w1), rep(b1), blk(w23), rep(b23), blk(w4), rep(b4))


def cascaded_forward(x, params, *, tile_n_target=16384, act_dtype=None):
    """Fused forward pass of CascadedModel via a single pallas_call.
    x: [N, d_in] (f32), returns [N, d_out] in x.dtype."""
    n, d_in = x.shape
    w1 = params[0]
    hid = w1.shape[1]
    d_out = params[6].shape[1]
    assert 128 % d_in == 0, "packed layout needs d_in to divide 128"
    pack = 128 // d_in

    if act_dtype is None:
        act_dtype = _default_act_dtype()

    kparams = prepare_kernel_params(params, pack)

    # Pack `pack` samples per lane-dense row; the reshape is a free row-major bitcast.
    n_pad = _round_up(n, pack)
    xp = x if n_pad == n else jnp.pad(x, ((0, n_pad - n), (0, 0)))
    rows = n_pad // pack
    xp = xp.reshape(rows, pack * d_in)
    lanes_out = pack * d_out

    tile_rows = _choose_tile_rows(rows, target_rows=max(1, tile_n_target // pack))
    grid = (pl.cdiv(rows, tile_rows),)                 # ragged last tile, no padding blowup

    def resident(a):  # full block, fetched once, stays in VMEM across the grid
        return pl.BlockSpec(a.shape, lambda i: (0, 0))

    io_bytes = x.dtype.itemsize
    cost = pl.CostEstimate(
        flops=2 * rows * sum(int(w.shape[0]) * int(w.shape[1]) for w in kparams[0::2]),
        transcendentals=2 * rows * pack * hid,
        bytes_accessed=rows * (pack * d_in + lanes_out) * io_bytes
        + sum(int(a.size) * a.dtype.itemsize for a in kparams),
    )

    kern = functools.partial(cascaded_kernel, act_dtype=act_dtype)

    out_p = pl.pallas_call(
        kern,
        out_shape=jax.ShapeDtypeStruct((rows, lanes_out), x.dtype),
        grid=grid,
        in_specs=[
            pl.BlockSpec((tile_rows, pack * d_in), lambda i: (i, 0)),  # x tile (pipelined)
            resident(kparams[0]), resident(kparams[1]),
            resident(kparams[2]), resident(kparams[3]),
            resident(kparams[4]), resident(kparams[5]),
        ],
        out_specs=pl.BlockSpec((tile_rows, lanes_out), lambda i: (i, 0)),
        compiler_params=pltpu.CompilerParams(
            dimension_semantics=("parallel",),         # split batch across TCs on v7x
            vmem_limit_bytes=32 * 1024 * 1024,
        ),
        cost_estimate=cost,
    )(xp, *kparams)

    out = out_p.reshape(n_pad, d_out)                  # free row-major reshape back
    return out if n_pad == n else out[:n]


def init_params(key, d_in=16, hidden=32, d_mid=16, d_out=16):
    """Deterministic synthetic parameters ([fan_in, fan_out], matching x @ W + b)."""
    ks = jax.random.split(key, 8)
    scale = 0.1
    w1 = scale * jax.random.normal(ks[0], (d_in, hidden), jnp.float32)
    b1 = scale * jax.random.normal(ks[1], (1, hidden), jnp.float32)
    w2 = scale * jax.random.normal(ks[2], (hidden, d_mid), jnp.float32)
    b2 = scale * jax.random.normal(ks[3], (1, d_mid), jnp.float32)
    w3 = scale * jax.random.normal(ks[4], (d_mid, hidden), jnp.float32)
    b3 = scale * jax.random.normal(ks[5], (1, hidden), jnp.float32)
    w4 = scale * jax.random.normal(ks[6], (hidden, d_out), jnp.float32)
    b4 = scale * jax.random.normal(ks[7], (1, d_out), jnp.float32)
    return (w1, b1, w2, b2, w3, b3, w4, b4)


def reference_forward(x, params):
    """Pure-JAX f32 reference mirroring the PyTorch forward (dpd then pa, unfolded)."""
    (w1, b1, w2, b2, w3, b3, w4, b4) = params
    h = jnp.tanh(x @ w1 + b1)
    y = h @ w2 + b2
    h2 = jnp.tanh(y @ w3 + b3)
    return h2 @ w4 + b4


if __name__ == "__main__":
    key = jax.random.PRNGKey(0)
    k_x, k_x2, k_p = jax.random.split(key, 3)

    # Small shapes: 16 features in/out, hidden 32, 16-dim dpd->pa interface.
    N, D_IN, HID, D_MID, D_OUT = 8, 16, 32, 16, 16
    params = init_params(k_p, d_in=D_IN, hidden=HID, d_mid=D_MID, d_out=D_OUT)

    # Case 1: tiny batch (single block).
    x = jax.random.normal(k_x, (N, D_IN), jnp.float32)
    out = jax.block_until_ready(cascaded_forward(x, params))
    ref = reference_forward(x, params)
    assert out.shape == ref.shape
    # bf16 weights / bf16 MXU inputs (f32 accumulation) => small quantization error.
    assert jnp.allclose(out, ref, atol=3e-2, rtol=3e-2), "mismatch vs reference (N=8)"

    # Case 2: multi-tile grid path (N=192 -> 24 packed rows, 3 grid steps).
    x2 = jax.random.normal(k_x2, (192, D_IN), jnp.float32)
    out2 = jax.block_until_ready(cascaded_forward(x2, params))
    ref2 = reference_forward(x2, params)
    assert out2.shape == ref2.shape
    assert jnp.allclose(out2, ref2, atol=3e-2, rtol=3e-2), "mismatch vs reference (N=192)"

    print("KERNEL_OK")
</pallas_src>

<mosaic_0001>
module attributes {stable_mosaic.version = 11 : i64} {
  func.func @cascaded_kernel(%arg0: i32, %arg1: memref<1x128xf32, #tpu.memory_space<vmem>>, %arg2: memref<128x256xbf16, #tpu.memory_space<vmem>>, %arg3: memref<1x256xf32, #tpu.memory_space<vmem>>, %arg4: memref<256x256xbf16, #tpu.memory_space<vmem>>, %arg5: memref<1x256xf32, #tpu.memory_space<vmem>>, %arg6: memref<256x128xbf16, #tpu.memory_space<vmem>>, %arg7: memref<1x128xf32, #tpu.memory_space<vmem>>, %arg8: memref<1x128xf32, #tpu.memory_space<vmem>>) attributes {dimension_semantics = [#tpu.dimension_semantics<parallel>], iteration_bounds = array<i64: 1>, scalar_prefetch = 0 : i64, scratch_operands = 0 : i64, tpu.core_type = #tpu.core_type<tc>, window_params = [{transform_indices = @transform_0, window_bounds = array<i64: 1, 128>}, {pipeline_mode = #tpu.pipeline_mode<synchronous>, transform_indices = @transform_1, window_bounds = array<i64: 128, 256>}, {pipeline_mode = #tpu.pipeline_mode<synchronous>, transform_indices = @transform_2, window_bounds = array<i64: 1, 256>}, {pipeline_mode = #tpu.pipeline_mode<synchronous>, transform_indices = @transform_3, window_bounds = array<i64: 256, 256>}, {pipeline_mode = #tpu.pipeline_mode<synchronous>, transform_indices = @transform_4, window_bounds = array<i64: 1, 256>}, {pipeline_mode = #tpu.pipeline_mode<synchronous>, transform_indices = @transform_5, window_bounds = array<i64: 256, 128>}, {pipeline_mode = #tpu.pipeline_mode<synchronous>, transform_indices = @transform_6, window_bounds = array<i64: 1, 128>}, {transform_indices = @transform_7, window_bounds = array<i64: 1, 128>}]} {
    %c0 = arith.constant 0 : index
    %c0_0 = arith.constant 0 : index
    %0 = vector.load %arg1[%c0, %c0_0] : memref<1x128xf32, #tpu.memory_space<vmem>>, vector<1x128xf32>
    %1 = arith.truncf %0 : vector<1x128xf32> to vector<1x128xbf16>
    %c0_1 = arith.constant 0 : index
    %c0_2 = arith.constant 0 : index
    %2 = vector.load %arg2[%c0_1, %c0_2] : memref<128x256xbf16, #tpu.memory_space<vmem>>, vector<128x256xbf16>
    %cst = arith.constant dense<0.000000e+00> : vector<1x256xf32>
    %3 = tpu.matmul %1, %2, %cst {dimension_numbers = #tpu.dot_dimension_numbers<[1], [0], [0], [1], [0, 0, 1, 1], [], []>} : vector<1x128xbf16>, vector<128x256xbf16>, vector<1x256xf32> -> vector<1x256xf32>
    %c0_3 = arith.constant 0 : index
    %c0_4 = arith.constant 0 : index
    %4 = vector.load %arg3[%c0_3, %c0_4] : memref<1x256xf32, #tpu.memory_space<vmem>>, vector<1x256xf32>
    %5 = arith.addf %3, %4 : vector<1x256xf32>
    %6 = math.tanh %5 : vector<1x256xf32>
    %7 = arith.truncf %6 : vector<1x256xf32> to vector<1x256xbf16>
    %c0_5 = arith.constant 0 : index
    %c0_6 = arith.constant 0 : index
    %8 = vector.load %arg4[%c0_5, %c0_6] : memref<256x256xbf16, #tpu.memory_space<vmem>>, vector<256x256xbf16>
    %cst_7 = arith.constant dense<0.000000e+00> : vector<1x256xf32>
    %9 = tpu.matmul %7, %8, %cst_7 {dimension_numbers = #tpu.dot_dimension_numbers<[1], [0], [0], [1], [0, 0, 1, 1], [], []>} : vector<1x256xbf16>, vector<256x256xbf16>, vector<1x256xf32> -> vector<1x256xf32>
    %c0_8 = arith.constant 0 : index
    %c0_9 = arith.constant 0 : index
    %10 = vector.load %arg5[%c0_8, %c0_9] : memref<1x256xf32, #tpu.memory_space<vmem>>, vector<1x256xf32>
    %11 = arith.addf %9, %10 : vector<1x256xf32>
    %12 = math.tanh %11 : vector<1x256xf32>
    %13 = arith.truncf %12 : vector<1x256xf32> to vector<1x256xbf16>
    %c0_10 = arith.constant 0 : index
    %c0_11 = arith.constant 0 : index
    %14 = vector.load %arg6[%c0_10, %c0_11] : memref<256x128xbf16, #tpu.memory_space<vmem>>, vector<256x128xbf16>
    %cst_12 = arith.constant dense<0.000000e+00> : vector<1x128xf32>
    %15 = tpu.matmul %13, %14, %cst_12 {dimension_numbers = #tpu.dot_dimension_numbers<[1], [0], [0], [1], [0, 0, 1, 1], [], []>} : vector<1x256xbf16>, vector<256x128xbf16>, vector<1x128xf32> -> vector<1x128xf32>
    %c0_13 = arith.constant 0 : index
    %c0_14 = arith.constant 0 : index
    %16 = vector.load %arg7[%c0_13, %c0_14] : memref<1x128xf32, #tpu.memory_space<vmem>>, vector<1x128xf32>
    %17 = arith.addf %15, %16 : vector<1x128xf32>
    %c0_15 = arith.constant 0 : index
    %c0_16 = arith.constant 0 : index
    %18 = vector.load %arg8[%c0_15, %c0_16] : memref<1x128xf32, #tpu.memory_space<vmem>>, vector<1x128xf32>
    tpu.vector_store %arg8[%c0_15, %c0_16], %17 {strides = array<i32>} : memref<1x128xf32, #tpu.memory_space<vmem>>, vector<1x128xf32>,
    return
  }
  func.func @transform_0(%arg0: i32) -> (i32, i32) {
    %c0_i32 = arith.constant 0 : i32
    %c0_i32_0 = arith.constant 0 : i32
    return %arg0, %c0_i32 : i32, i32
  }
  func.func @transform_1(%arg0: i32) -> (i32, i32) {
    %c0_i32 = arith.constant 0 : i32
    %c0_i32_0 = arith.constant 0 : i32
    %c0_i32_1 = arith.constant 0 : i32
    return %c0_i32, %c0_i32_0 : i32, i32
  }
  func.func @transform_2(%arg0: i32) -> (i32, i32) {
    %c0_i32 = arith.constant 0 : i32
    %c0_i32_0 = arith.constant 0 : i32
    %c0_i32_1 = arith.constant 0 : i32
    return %c0_i32, %c0_i32_0 : i32, i32
  }
  func.func @transform_3(%arg0: i32) -> (i32, i32) {
    %c0_i32 = arith.constant 0 : i32
    %c0_i32_0 = arith.constant 0 : i32
    %c0_i32_1 = arith.constant 0 : i32
    return %c0_i32, %c0_i32_0 : i32, i32
  }
  func.func @transform_4(%arg0: i32) -> (i32, i32) {
    %c0_i32 = arith.constant 0 : i32
    %c0_i32_0 = arith.constant 0 : i32
    %c0_i32_1 = arith.constant 0 : i32
    return %c0_i32, %c0_i32_0 : i32, i32
  }
  func.func @transform_5(%arg0: i32) -> (i32, i32) {
    %c0_i32 = arith.constant 0 : i32
    %c0_i32_0 = arith.constant 0 : i32
    %c0_i32_1 = arith.constant 0 : i32
    return %c0_i32, %c0_i32_0 : i32, i32
  }
  func.func @transform_6(%arg0: i32) -> (i32, i32) {
    %c0_i32 = arith.constant 0 : i32
    %c0_i32_0 = arith.constant 0 : i32
    %c0_i32_1 = arith.constant 0 : i32
    return %c0_i32, %c0_i32_0 : i32, i32
  }
  func.func @transform_7(%arg0: i32) -> (i32, i32) {
    %c0_i32 = arith.constant 0 : i32
    %c0_i32_0 = arith.constant 0 : i32
    return %arg0, %c0_i32 : i32, i32
  }
}

</mosaic_0001>

<bundles_post_ra>
// kernel: tpu_custom_call.1
= control target key start
LH: loop header
LB: loop body
LE: loop exit
PB: predicated region body
PF: predicated region fallthrough
CT: control target
= control target key end

     0   :  { %12 = vsyncpa [#allocation3], 0  ;;  %s1228_s0 = inlined_call_operand.hbm [shape: f32[1,128], index: 0, kind: input, shape index: {}]   ;;  %s1229_s1 = inlined_call_operand.hbm [shape: bf16[128,256], index: 1, kind: input, shape index: {}]   ;;  %s1230_s2 = inlined_call_operand.hbm [shape: f32[1,256], index: 2, kind: input, shape index: {}]   ;;  %s1231_s3 = inlined_call_operand.hbm [shape: bf16[256,256], index: 3, kind: input, shape index: {}]   ;;  %s1232_s4 = inlined_call_operand.vmem [shape: f32[1,256], index: 4, kind: input, shape index: {}]   ;;  %s1233_s5 = inlined_call_operand.hbm [shape: bf16[256,128], index: 5, kind: input, shape index: {}]   ;;  %s1234_s6 = inlined_call_operand.vmem [shape: f32[1,128], index: 6, kind: input, shape index: {}]   ;;  %s1235_s7 = inlined_call_operand.hbm [shape: f32[1,128], index: 7, kind: output, shape index: {}]  }
   0x1   :  { %13 = vsyncpa [#allocation6], 0 }
   0x2   :  { %14 = vsyncpa [#allocation9], 0  ;;  %s31_s26 = sshll.u32 %s1229_s1, 4  ;;  %s32_s26 = int_to_ptr.hbm [resolvable:$true] %s31_s26 }
   0x3   :  { %15 = vsyncpa [#allocation4], 0  ;;  %s1154_s27 = smov [#allocation5]   ;;  %s55_s8 = sshll.u32 %s1231_s3, 4  ;;  %s56_s8 = int_to_ptr.hbm [resolvable:$true] %s55_s8 }
   0x4   :  { %s33_s28 = sshll.u32 %s1154_s27, 4  ;;  %s1155_s9 = smov 128   ;;  %s34_s28 = int_to_ptr.vmem [resolvable:$true] %s33_s28 }
   0x5   :  { %s1156_s10 = smov 8   ;;  %s1157_s11 = smov [#allocation8]  }
   0x6   :  { %39 = dma.hbm_to_vmem [thread:$0]  %s32_s26, 2048, %s34_s28, [#allocation6], %s1155_s9, %s1155_s9, %s1156_s10  }
   0x7   :  { %s57_s12 = sshll.u32 %s1157_s11, 4  ;;  %s21_s15 = sshll.u32 %s1228_s0, 4  ;;  %s58_s12 = int_to_ptr.vmem [resolvable:$true] %s57_s12  ;;  %s22_s15 = int_to_ptr.hbm [resolvable:$true] %s21_s15 }
   0x8   :  { %63 = dma.hbm_to_vmem [thread:$0]  %s56_s8, 4096, %s58_s12, [#allocation9], %s1155_s9, %s1155_s9, %s1156_s10  }
   0x9   :  { %s45_s17 = sshll.u32 %s1230_s2, 4  ;;  %s1158_s18 = smov [#allocation2]   ;;  %s46_s17 = int_to_ptr.hbm [resolvable:$true] %s45_s17 }
   0xa   :  { %s23_s19 = sshll.u32 %s1158_s18, 4  ;;  %s1159_s3 = smov [#allocation7]   ;;  %s24_s19 = int_to_ptr.vmem [resolvable:$true] %s23_s19 }
   0xb   :  { %26 = dma.hbm_to_vmem [thread:$0]  %s22_s15, 16, %s24_s19, [#allocation3]  }
   0xc   :  { %s47_s20 = sshll.u32 %s1159_s3, 4  ;;  %s70_s23 = sshll.u32 %s1233_s5, 4  ;;  %s48_s20 = int_to_ptr.vmem [resolvable:$true] %s47_s20  ;;  %s71_s23 = int_to_ptr.hbm [resolvable:$true] %s70_s23 }
   0xd   :  { %50 = dma.hbm_to_vmem [thread:$0]  %s46_s17, 32, %s48_s20, [#allocation6]  }
   0xe   :  { %s1160_s0 = smov [#allocation10]   ;;  %s1161_s25 = smov 64  }
   0xf   :  { %s72_s24 = sshll.u32 %s1160_s0, 4  ;;  %s1162_s26 = smov 4   ;;  %s73_s24 = int_to_ptr.vmem [resolvable:$true] %s72_s24 }
  0x10   :  { %78 = dma.hbm_to_vmem [thread:$0]  %s71_s23, 2048, %s73_s24, [#allocation9], %s1161_s25, %s1161_s25, %s1162_s26  }
  0x11   :  { %1146 = dma.done.wait [#allocation3], 16  }
  0x12   :  { %1147 = vsyncadd [#allocation3], 4294967280 }
  0x13   :  { %1148 = dma.done.wait [#allocation6], 2080  }
  0x14   :  { %1149 = vsyncadd [#allocation6], 4294965216 }
  0x15   :  { %1150 = dma.done.wait [#allocation9], 6144  }
  0x16   :  { %1151 = vsyncadd [#allocation9], 4294961152  ;;  %v722_v0 = vld [vmem:[#allocation5 + $0x70] sm:$0xf]  ;;  %v935_v1 = vld [vmem:[#allocation5 + $0x74] sm:$0xf0] }
  0x17   :  { %v934_v2 = vld [vmem:[#allocation5 + $0x74] sm:$0xf]  ;;  %v723_v3 = vor.u32 %v935_v1, %v722_v0  ;;  %v724_v4 = vld [vmem:[#allocation5 + $0x78] sm:$0xf0]  ;;  %v714_v5 = vld [vmem:[#allocation5 + $0x60] sm:$0xf] }
  0x18   :  { %v933_v6 = vld [vmem:[#allocation5 + $0x64] sm:$0xf0]  ;;  %v727_v7 = vor.u32 %v934_v2, %v724_v4  ;;  %v932_v8 = vld [vmem:[#allocation5 + $0x64] sm:$0xf]  ;;  %v716_v9 = vld [vmem:[#allocation5 + $0x68] sm:$0xf0] }
  0x19   :  { %205 = vmatpush.bf16.msra.mxu0 %v723_v3  ;;  %v715_v10 = vor.u32 %v933_v6, %v714_v5  ;;  %v719_v11 = vor.u32 %v932_v8, %v716_v9  ;;  %v706_v12 = vld [vmem:[#allocation5 + $0x50] sm:$0xf]  ;;  %v931_v13 = vld [vmem:[#allocation5 + $0x54] sm:$0xf0]  ;;  %v930_v14 = vld [vmem:[#allocation5 + $0x54] sm:$0xf] }
  0x1a   :  { %218 = vmatpush.bf16.msra.mxu1 %v727_v7  ;;  %v708_v15 = vld [vmem:[#allocation5 + $0x58] sm:$0xf0]  ;;  %v707_v16 = vor.u32 %v931_v13, %v706_v12  ;;  %v698_v18 = vld [vmem:[#allocation5 + $0x40] sm:$0xf]  ;;  %v929_v19 = vld [vmem:[#allocation5 + $0x44] sm:$0xf0] }
  0x1b   :  { %v711_v17 = vor.u32 %v930_v14, %v708_v15  ;;  %v928_v20 = vld [vmem:[#allocation5 + $0x44] sm:$0xf]  ;;  %v700_v21 = vld [vmem:[#allocation5 + $0x48] sm:$0xf0]  ;;  %v699_v22 = vor.u32 %v929_v19, %v698_v18  ;;  %v786_v23 = vld [vmem:[#allocation8 + $0x70] sm:$0xf] }
  0x1c   :  { %v951_v24 = vld [vmem:[#allocation8 + $0x74] sm:$0xf0]  ;;  %v850_v25 = vld [vmem:[#allocation8 + $0xf0] sm:$0xf]  ;;  %v703_v26 = vor.u32 %v928_v20, %v700_v21  ;;  %v778_v34 = vld [vmem:[#allocation8 + $0x60] sm:$0xf] }
  0x1d   :  { %206 = vmatpush.bf16.msra.mxu0 %v715_v10  ;;  %v690_v27 = vld [vmem:[#allocation5 + $0x30] sm:$0xf]  ;;  %v927_v28 = vld [vmem:[#allocation5 + $0x34] sm:$0xf0]  ;;  %v787_v29 = vor.u32 %v951_v24, %v786_v23  ;;  %v926_v31 = vld [vmem:[#allocation5 + $0x34] sm:$0xf] }
  0x1e   :  { %219 = vmatpush.bf16.msra.mxu1 %v719_v11  ;;  %v967_v30 = vld [vmem:[#allocation8 + $0xf4] sm:$0xf0]  ;;  %v949_v35 = vld [vmem:[#allocation8 + $0x64] sm:$0xf0]  ;;  %v842_v36 = vld [vmem:[#allocation8 + $0xe0] sm:$0xf]  ;;  %v691_v38 = vor.u32 %v927_v28, %v690_v27 }
  0x1f   :  { %v692_v32 = vld [vmem:[#allocation5 + $0x38] sm:$0xf0]  ;;  %v851_v33 = vor.u32 %v967_v30, %v850_v25  ;;  %433 = vmatpush.bf16.msra.mxu2 %v787_v29  ;;  %v965_v37 = vld [vmem:[#allocation8 + $0xe4] sm:$0xf0]  ;;  %v682_v39 = vld [vmem:[#allocation5 + $0x20] sm:$0xf]  ;;  %v779_v41 = vor.u32 %v949_v35, %v778_v34 }
  0x20   :  { %v925_v40 = vld [vmem:[#allocation5 + $0x24] sm:$0xf0]  ;;  %v843_v42 = vor.u32 %v965_v37, %v842_v36  ;;  %v695_v43 = vor.u32 %v926_v31, %v692_v32  ;;  %v924_v44 = vld [vmem:[#allocation5 + $0x24] sm:$0xf]  ;;  %v770_v45 = vld [vmem:[#allocation8 + $0x50] sm:$0xf] }
  0x21   :  { %207 = vmatpush.bf16.msra.mxu0 %v707_v16  ;;  %446 = vmatpush.bf16.msra.mxu3 %v851_v33  ;;  %v947_v46 = vld [vmem:[#allocation8 + $0x54] sm:$0xf0]  ;;  %v684_v47 = vld [vmem:[#allocation5 + $0x28] sm:$0xf0]  ;;  %v834_v48 = vld [vmem:[#allocation8 + $0xd0] sm:$0xf]  ;;  %v683_v51 = vor.u32 %v925_v40, %v682_v39 }
  0x22   :  { %220 = vmatpush.bf16.msra.mxu1 %v711_v17  ;;  %v963_v49 = vld [vmem:[#allocation8 + $0xd4] sm:$0xf0]  ;;  %v771_v50 = vor.u32 %v947_v46, %v770_v45  ;;  %v674_v52 = vld [vmem:[#allocation5 + $0x10] sm:$0xf]  ;;  %v762_v54 = vld [vmem:[#allocation8 + $0x40] sm:$0xf]  ;;  %v687_v56 = vor.u32 %v924_v44, %v684_v47 }
  0x23   :  { %434 = vmatpush.bf16.msra.mxu2 %v779_v41  ;;  %v835_v53 = vor.u32 %v963_v49, %v834_v48  ;;  %v945_v55 = vld [vmem:[#allocation8 + $0x44] sm:$0xf0]  ;;  %v923_v57 = vld [vmem:[#allocation5 + $0x14] sm:$0xf0]  ;;  %v826_v58 = vld [vmem:[#allocation8 + $0xc0] sm:$0xf] }
  0x24   :  { %v961_v59 = vld [vmem:[#allocation8 + $0xc4] sm:$0xf0]  ;;  %v922_v60 = vld [vmem:[#allocation5 + $0x14] sm:$0xf]  ;;  %v676_v61 = vld [vmem:[#allocation5 + $0x18] sm:$0xf0]  ;;  %v763_v63 = vor.u32 %v945_v55, %v762_v54  ;;  %v675_v0 = vor.u32 %v923_v57, %v674_v52 }
  0x25   :  { %208 = vmatpush.bf16.msra.mxu0 %v699_v22  ;;  %447 = vmatpush.bf16.msra.mxu3 %v843_v42  ;;  %v666_v62 = vld [vmem:[#allocation5] sm:$0xf]  ;;  %v921_v1 = vld [vmem:[#allocation5 + $0x4] sm:$0xf0]  ;;  %v827_v2 = vor.u32 %v961_v59, %v826_v58  ;;  %v754_v3 = vld [vmem:[#allocation8 + $0x30] sm:$0xf]  ;;  %v679_v5 = vor.u32 %v922_v60, %v676_v61 }
  0x26   :  { %221 = vmatpush.bf16.msra.mxu1 %v703_v26  ;;  %v943_v4 = vld [vmem:[#allocation8 + $0x34] sm:$0xf0]  ;;  %v920_v6 = vld [vmem:[#allocation5 + $0x4] sm:$0xf]  ;;  %v818_v7 = vld [vmem:[#allocation8 + $0xb0] sm:$0xf]  ;;  %v667_v15 = vor.u32 %v921_v1, %v666_v62 }
  0x27   :  { %435 = vmatpush.bf16.msra.mxu2 %v771_v50  ;;  %v959_v8 = vld [vmem:[#allocation8 + $0xb4] sm:$0xf0]  ;;  %v668_v9 = vld [vmem:[#allocation5 + $0x8] sm:$0xf0]  ;;  %v950_v10 = vld [vmem:[#allocation8 + $0x74] sm:$0xf]  ;;  %v755_v14 = vor.u32 %v943_v4, %v754_v3 }
  0x28   :  { %v788_v11 = vld [vmem:[#allocation8 + $0x78] sm:$0xf0]  ;;  %v966_v12 = vld [vmem:[#allocation8 + $0xf4] sm:$0xf]  ;;  %v819_v17 = vor.u32 %v959_v8, %v818_v7  ;;  %v671_v18 = vor.u32 %v920_v6, %v668_v9  ;;  %v948_v21 = vld [vmem:[#allocation8 + $0x64] sm:$0xf] }
  0x29   :  { %209 = vmatpush.bf16.msra.mxu0 %v691_v38  ;;  %448 = vmatpush.bf16.msra.mxu3 %v835_v53  ;;  %v852_v13 = vld [vmem:[#allocation8 + $0xf8] sm:$0xf0]  ;;  %v791_v19 = vor.u32 %v950_v10, %v788_v11  ;;  %v780_v22 = vld [vmem:[#allocation8 + $0x68] sm:$0xf0]  ;;  %v964_v24 = vld [vmem:[#allocation8 + $0xe4] sm:$0xf] }
  0x2a   :  { %222 = vmatpush.bf16.msra.mxu1 %v695_v43  ;;  %v101_v16 = vld [vmem:[#allocation2] sm:$0x1]  ;;  %v855_v20 = vor.u32 %v966_v12, %v852_v13  ;;  %v844_v25 = vld [vmem:[#allocation8 + $0xe8] sm:$0xf0]  ;;  %v783_v26 = vor.u32 %v948_v21, %v780_v22  ;;  %v946_v28 = vld [vmem:[#allocation8 + $0x54] sm:$0xf] }
  0x2b   :  { %436 = vmatpush.bf16.msra.mxu2 %v763_v63  ;;  %v102_v23 = vpack.c.bf16 %v101_v16, %v101_v16  ;;  %v847_v27 = vor.u32 %v964_v24, %v844_v25  ;;  %v772_v29 = vld [vmem:[#allocation8 + $0x58] sm:$0xf0]  ;;  %v962_v30 = vld [vmem:[#allocation8 + $0xd4] sm:$0xf]  ;;  %v944_v34 = vld [vmem:[#allocation8 + $0x44] sm:$0xf] }
  0x2c   :  { %v836_v31 = vld [vmem:[#allocation8 + $0xd8] sm:$0xf0]  ;;  %v775_v32 = vor.u32 %v946_v28, %v772_v29  ;;  %v764_v35 = vld [vmem:[#allocation8 + $0x48] sm:$0xf0]  ;;  %v960_v36 = vld [vmem:[#allocation8 + $0xc4] sm:$0xf] }
  0x2d   :  { %210 = vmatpush.bf16.msra.mxu0 %v683_v51  ;;  %449 = vmatpush.bf16.msra.mxu3 %v827_v2  ;;  %v839_v33 = vor.u32 %v962_v30, %v836_v31  ;;  %v828_v37 = vld [vmem:[#allocation8 + $0xc8] sm:$0xf0]  ;;  %v767_v38 = vor.u32 %v944_v34, %v764_v35  ;;  %v942_v40 = vld [vmem:[#allocation8 + $0x34] sm:$0xf]  ;;  %v756_v41 = vld [vmem:[#allocation8 + $0x38] sm:$0xf0] }
  0x2e   :  { %223 = vmatpush.bf16.msra.mxu1 %v687_v56  ;;  %v831_v39 = vor.u32 %v960_v36, %v828_v37  ;;  %v958_v42 = vld [vmem:[#allocation8 + $0xb4] sm:$0xf]  ;;  %v820_v43 = vld [vmem:[#allocation8 + $0xb8] sm:$0xf0]  ;;  %v759_v44 = vor.u32 %v942_v40, %v756_v41  ;;  %v746_v46 = vld [vmem:[#allocation8 + $0x20] sm:$0xf] }
  0x2f   :  { %437 = vmatpush.bf16.msra.mxu2 %v755_v14  ;;  %v823_v45 = vor.u32 %v958_v42, %v820_v43  ;;  %v941_v47 = vld [vmem:[#allocation8 + $0x24] sm:$0xf0]  ;;  %v810_v48 = vld [vmem:[#allocation8 + $0xa0] sm:$0xf]  ;;  %v940_v51 = vld [vmem:[#allocation8 + $0x24] sm:$0xf] }
  0x30   :  { %v747_v49 = vor.u32 %v941_v47, %v746_v46  ;;  %v957_v50 = vld [vmem:[#allocation8 + $0xa4] sm:$0xf0]  ;;  %v748_v53 = vld [vmem:[#allocation8 + $0x28] sm:$0xf0]  ;;  %v956_v54 = vld [vmem:[#allocation8 + $0xa4] sm:$0xf] }
  0x31   :  { %211 = vmatpush.bf16.msra.mxu0 %v675_v0  ;;  %450 = vmatpush.bf16.msra.mxu3 %v819_v17  ;;  %v811_v52 = vor.u32 %v957_v50, %v810_v48  ;;  %v812_v55 = vld [vmem:[#allocation8 + $0xa8] sm:$0xf0]  ;;  %v751_v56 = vor.u32 %v940_v51, %v748_v53  ;;  %v738_v58 = vld [vmem:[#allocation8 + $0x10] sm:$0xf]  ;;  %v939_v59 = vld [vmem:[#allocation8 + $0x14] sm:$0xf0] }
  0x32   :  { %224 = vmatpush.bf16.msra.mxu1 %v679_v5  ;;  %v815_v57 = vor.u32 %v956_v54, %v812_v55  ;;  %v802_v60 = vld [vmem:[#allocation8 + $0x90] sm:$0xf]  ;;  %v739_v61 = vor.u32 %v939_v59, %v738_v58  ;;  %v955_v62 = vld [vmem:[#allocation8 + $0x94] sm:$0xf0]  ;;  %v938_v63 = vld [vmem:[#allocation8 + $0x14] sm:$0xf] }
  0x33   :  { %438 = vmatpush.bf16.msra.mxu2 %v747_v49  ;;  %v740_v0 = vld [vmem:[#allocation8 + $0x18] sm:$0xf0]  ;;  %v803_v1 = vor.u32 %v955_v62, %v802_v60  ;;  %v954_v3 = vld [vmem:[#allocation8 + $0x94] sm:$0xf]  ;;  %v730_v6 = vld [vmem:[#allocation8] sm:$0xf] }
  0x34   :  { %v743_v2 = vor.u32 %v938_v63, %v740_v0  ;;  %v804_v4 = vld [vmem:[#allocation8 + $0x98] sm:$0xf0]  ;;  %v937_v7 = vld [vmem:[#allocation8 + $0x4] sm:$0xf0]  ;;  %v794_v8 = vld [vmem:[#allocation8 + $0x80] sm:$0xf] }
  0x35   :  { %212 = vmatpush.bf16.msra.mxu0 %v667_v15  ;;  %451 = vmatpush.bf16.msra.mxu3 %v811_v52  ;;  %v807_v5 = vor.u32 %v954_v3, %v804_v4  ;;  %v731_v9 = vor.u32 %v937_v7, %v730_v6  ;;  %v953_v10 = vld [vmem:[#allocation8 + $0x84] sm:$0xf0]  ;;  %v936_v11 = vld [vmem:[#allocation8 + $0x4] sm:$0xf]  ;;  %v732_v12 = vld [vmem:[#allocation8 + $0x8] sm:$0xf0] }
  0x36   :  { %225 = vmatpush.bf16.msra.mxu1 %v671_v18  ;;  %v795_v13 = vor.u32 %v953_v10, %v794_v8  ;;  %v735_v14 = vor.u32 %v936_v11, %v732_v12  ;;  %v952_v15 = vld [vmem:[#allocation8 + $0x84] sm:$0xf]  ;;  %v796_v16 = vld [vmem:[#allocation8 + $0x88] sm:$0xf0]  ;;  %v983_v18 = vld [vmem:[#allocation10 + $0x78] sm:$0xff]  ;;  %s1163_s28 = smov [#allocation11]  }
  0x37   :  { %439 = vmatpush.bf16.msra.mxu2 %v739_v61  ;;  %v799_v17 = vor.u32 %v952_v15, %v796_v16  ;;  %v974_v21 = vld [vmem:[#allocation10 + $0x30] sm:$0xff]  ;;  %v981_v22 = vld [vmem:[#allocation10 + $0x68] sm:$0xff]  ;;  %v980_v24 = vld [vmem:[#allocation10 + $0x60] sm:$0xff]  ;;  %s650_s29 = sshll.u32 %s1163_s28, 4  ;;  %s652_s9 = sshll.u32 %s1235_s7, 4  ;;  %s651_s29 = int_to_ptr.vmem [resolvable:$true] %s650_s29  ;;  %s653_s9 = int_to_ptr.hbm [resolvable:$true] %s652_s9 }
  0x38   :  { %213 = vmatmul.bf16.vlgmr.msra.gmra.mxu0 %v102_v23  ;;  %v119_v25 = vld [vmem:[#allocation7] sm:$0x3]  ;;  %v978_v40 = vld [vmem:[#allocation10 + $0x50] sm:$0xff]  ;;  %v977_v42 = vld [vmem:[#allocation10 + $0x48] sm:$0xff] }
  0x39   :  { %459 = vmatpush.bf16.msrb.mxu0 %v791_v19  ;;  %226 = vmatmul.bf16.vlgmr.msra.gmra.mxu1 %v102_v23  ;;  %v975_v19 = vld [vmem:[#allocation10 + $0x38] sm:$0xff]  ;;  %v973_v23 = vld [vmem:[#allocation10 + $0x28] sm:$0xff]  ;;  %v202_v28 = vperm.slane %v119_v25, 1  ;;  %v970_v43 = vld [vmem:[#allocation10 + $0x10] sm:$0xff] }
  0x3a   :  { %472 = vmatpush.bf16.msrb.mxu1 %v855_v20  ;;  %452 = vmatpush.bf16.msra.mxu3 %v803_v1  ;;  %v982_v20 = vld [vmem:[#allocation10 + $0x70] sm:$0xff]  ;;  %v971_v41 = vld [vmem:[#allocation10 + $0x18] sm:$0xff]  ;;  %v968_v46 = vld [vmem:[#allocation10] sm:$0xff] }
  0x3b   :  { %440 = vmatpush.bf16.msra.mxu2 %v731_v9  ;;  %v267_v47 = vld [vmem:[%s1232_s4] sm:$0x3] }
  0x3c   :  { %v430_v48 = vperm.slane %v267_v47, 1  ;;  %v429_v53 = vperm.slane %v267_v47, 0  ;;  %v521_v3 = vld [vmem:[%s1234_s6] sm:$0x1] }
  0x3d   :  { %460 = vmatpush.bf16.msrb.mxu0 %v783_v26  ;;  %v979_v26 = vld [vmem:[#allocation10 + $0x58] sm:$0xff] }
  0x3e   :  { %473 = vmatpush.bf16.msrb.mxu1 %v847_v27  ;;  %453 = vmatpush.bf16.msra.mxu3 %v795_v13  ;;  %v201_v27 = vperm.slane %v119_v25, 0 }
  0x3f   :  { %618 = vmatpush.bf16.msrb.mxu2 %v975_v19 }
  0x41   :  { %461 = vmatpush.bf16.msrb.mxu0 %v775_v32 }
  0x42   :  { %474 = vmatpush.bf16.msrb.mxu1 %v839_v33  ;;  %631 = vmatpush.bf16.msrb.mxu3 %v983_v18 }
  0x43   :  { %619 = vmatpush.bf16.msrb.mxu2 %v974_v21 }
  0x45   :  { %462 = vmatpush.bf16.msrb.mxu0 %v767_v38 }
  0x46   :  { %475 = vmatpush.bf16.msrb.mxu1 %v831_v39  ;;  %632 = vmatpush.bf16.msrb.mxu3 %v982_v20  ;;  %v972_v39 = vld [vmem:[#allocation10 + $0x20] sm:$0xff] }
  0x47   :  { %620 = vmatpush.bf16.msrb.mxu2 %v973_v23 }
  0x49   :  { %463 = vmatpush.bf16.msrb.mxu0 %v759_v44  ;;  %v976_v44 = vld [vmem:[#allocation10 + $0x40] sm:$0xff] }
  0x4a   :  { %476 = vmatpush.bf16.msrb.mxu1 %v823_v45  ;;  %633 = vmatpush.bf16.msrb.mxu3 %v981_v22  ;;  %v969_v45 = vld [vmem:[#allocation10 + $0x8] sm:$0xff] }
  0x4b   :  { %621 = vmatpush.bf16.msrb.mxu2 %v972_v39 }
  0x4d   :  { %464 = vmatpush.bf16.msrb.mxu0 %v751_v56 }
  0x4e   :  { %477 = vmatpush.bf16.msrb.mxu1 %v815_v57  ;;  %634 = vmatpush.bf16.msrb.mxu3 %v980_v24 }
  0x4f   :  { %622 = vmatpush.bf16.msrb.mxu2 %v971_v41 }
  0x51   :  { %465 = vmatpush.bf16.msrb.mxu0 %v743_v2 }
  0x52   :  { %478 = vmatpush.bf16.msrb.mxu1 %v807_v5  ;;  %635 = vmatpush.bf16.msrb.mxu3 %v979_v26 }
  0x53   :  { %623 = vmatpush.bf16.msrb.mxu2 %v970_v43 }
  0x55   :  { %466 = vmatpush.bf16.msrb.mxu0 %v735_v14 }
  0x56   :  { %479 = vmatpush.bf16.msrb.mxu1 %v799_v17  ;;  %636 = vmatpush.bf16.msrb.mxu3 %v978_v40 }
  0x57   :  { %624 = vmatpush.bf16.msrb.mxu2 %v969_v45 }
  0x5a   :  { %637 = vmatpush.bf16.msrb.mxu3 %v977_v42 }
  0x5b   :  { %625 = vmatpush.bf16.msrb.mxu2 %v968_v46 }
  0x5e   :  { %638 = vmatpush.bf16.msrb.mxu3 %v976_v44 }
  0xb5   :  { %v214_v29 = vpop.f32.mrf.mxu0 }
  0xb6   :  { %v215_v30 = vadd.f32 %v214_v29, %v201_v27  ;;  %v227_v31 = vpop.f32.mrf.mxu1 }
  0xb7   :  { %v228_v32 = vadd.f32 %v227_v31, %v202_v28 }
  0xb8   :  { %994 = vtanh.f32 %v215_v30 }
  0xb9   :  { %996 = vtanh.f32 %v228_v32 }
  0xbd   :  { %v216_v33 = vpop.f32.mrf.mxu0 }
  0xbe   :  { %v995_v34 = vpop.eup %994  ;;  %v229_v35 = vpop.f32.mrf.mxu1 }
  0xbf   :  { %v997_v36 = vpop.eup %996  ;;  %v233_v37 = vpack.c.bf16 %v995_v34, %v995_v34 }
  0xc0   :  { %v234_v38 = vpack.c.bf16 %v997_v36, %v997_v36 }
  0xc1   :  { %441 = vmatmul.bf16.vlgmr.msra.gmra.mxu2 %v233_v37  ;;  %467 = vmatmul.bf16.vlgmr.msrb.gmra.mxu0 %v233_v37 }
  0xc2   :  { %454 = vmatmul.bf16.vlgmr.msra.gmra.mxu3 %v234_v38  ;;  %480 = vmatmul.bf16.vlgmr.msrb.gmra.mxu1 %v234_v38 }
 0x13e   :  { %v468_v49 = vpop.f32.mrf.mxu0 }
 0x13f   :  { %v469_v50 = vadd.f32 %v468_v49, %v430_v48  ;;  %v481_v51 = vpop.f32.mrf.mxu1 }
 0x141   :  { %v482_v52 = vadd.f32 %v481_v51, %v469_v50 }
 0x143   :  { %998 = vtanh.f32 %v482_v52 }
 0x144   :  { %v442_v54 = vpop.f32.mrf.mxu2 }
 0x145   :  { %v443_v55 = vadd.f32 %v442_v54, %v429_v53  ;;  %v455_v56 = vpop.f32.mrf.mxu3 }
 0x146   :  { %v470_v57 = vpop.f32.mrf.mxu0 }
 0x147   :  { %v456_v58 = vadd.f32 %v455_v56, %v443_v55  ;;  %v483_v59 = vpop.f32.mrf.mxu1 }
 0x149   :  { %v999_v60 = vpop.eup %998  ;;  %1000 = vtanh.f32 %v456_v58 }
 0x14a   :  { %v488_v61 = vpack.c.bf16 %v999_v60, %v999_v60 }
 0x14c   :  { %v444_v62 = vpop.f32.mrf.mxu2  ;;  %639 = vmatmul.bf16.vlgmr.msrb.gmra.mxu3 %v488_v61 }
 0x14d   :  { %v457_v63 = vpop.f32.mrf.mxu3 }
 0x14f   :  { %v1001_v0 = vpop.eup %1000 }
 0x150   :  { %v487_v1 = vpack.c.bf16 %v1001_v0, %v1001_v0 }
 0x152   :  { %626 = vmatmul.bf16.vlgmr.msrb.gmra.mxu2 %v487_v1 }
 0x1cf   :  { %v640_v2 = vpop.f32.mrf.mxu3 }
 0x1d5   :  { %v627_v4 = vpop.f32.mrf.mxu2 }
 0x1d6   :  { %v628_v5 = vadd.f32 %v627_v4, %v521_v3 }
 0x1d7   :  { %v642_v6 = vpop.f32.mrf.mxu3 }
 0x1d8   :  { %v641_v7 = vadd.f32 %v640_v2, %v628_v5 }
 0x1da   :  { %644 = vst [vmem:[#allocation11] sm:$0x1] %v641_v7 }
 0x1db   :  { %655 = dma.vmem_to_hbm [thread:$0]  %s651_s29, 16, %s653_s9, [#allocation4]  }
 0x1dd   :  { %v629_v8 = vpop.f32.mrf.mxu2 }
 0x1de   :  { %1152 = dma.done.wait [#allocation4], 16  }
 0x1df   :  { %1153 = vsyncadd [#allocation4], 4294967280 }
 0x1e0   :  { %660 = vsyncpa [#allocation3], 1 }
 0x1e1   :  { %661 = vsyncpa [#allocation6], 1 }
 0x1e2   :  { %662 = vsyncpa [#allocation9], 1 }
 0x1e3   :  { %663 = vsyncpa [#allocation4], 1 }

</bundles_post_ra>
